<compile_context>
chip_gen: v7x
topology: tpu7x:2x2x1
jax: 0.10.0
libtpu: 0.0.40
codegen_flags: <defaults>
</compile_context>

<pallas_src>
import functools

import numpy as np
import jax
import jax.numpy as jnp
from jax.experimental import pallas as pl
from jax.experimental.pallas import tpu as pltpu


# ----------------------------------------------------------------------------
# Stage 1: value projection  (value = (src @ Wv + bv) * (1 - padding_mask))
# ----------------------------------------------------------------------------
def _value_proj_kernel(src_ref, mask_ref, wv_ref, vec_ref, out_ref):
    v = jnp.dot(src_ref[0], wv_ref[...], preferred_element_type=jnp.float32)
    v = v + vec_ref[0:1, :]                       # bv (row 0 of the packed slab)
    out_ref[0] = (v * (1.0 - mask_ref[0])).astype(out_ref.dtype)


# ----------------------------------------------------------------------------
# Stage 2: one full DeformableTransformerEncoderLayer for one (batch, q-tile)
# ----------------------------------------------------------------------------
def _encoder_layer_kernel(src_ref, pos_ref, refx_ref, refy_ref, value_ref,
                          coords_ref, woa_ref, boa_ref, wout_ref, vec_ref,
                          w1_ref, b1_ref, w2_ref,
                          out_ref,
                          *, spatial_shapes, n_heads, n_points):
    L = len(spatial_shapes)
    P = n_points
    H = n_heads
    HLP = H * L * P
    LP = L * P

    src = src_ref[0]                              # (TQ, C)
    pos = pos_ref[0]
    TQ, C = src.shape
    Dh = C // H

    query = src + pos                             # with_pos_embed

    # fused sampling-offset + attention-logit projection (single MXU call)
    oa = jnp.dot(query, woa_ref[...], preferred_element_type=jnp.float32) + boa_ref[...]
    # pixel-space sampling coords for ALL (head, level, point) columns at once.
    # refx/refy already hold ref*W_l - 0.5 (grid_sample align_corners=False), so the
    # raw offsets add directly (ref + off/W_l scaled by W_l == ref*W_l + off).
    px = refx_ref[0] + oa[:, 0:HLP]               # (TQ, HLP)
    py = refy_ref[0] + oa[:, HLP:2 * HLP]
    aw = oa[:, 2 * HLP:3 * HLP]

    # per-head softmax over the L*P sampling weights (f32, EUP reciprocal)
    aw_heads = []
    for h in range(H):
        a_h = aw[:, h * LP:(h + 1) * LP]
        a_h = a_h - jnp.max(a_h, axis=-1, keepdims=True)
        e_h = jnp.exp(a_h)
        inv = pl.reciprocal(jnp.sum(e_h, axis=-1, keepdims=True), approx=True)
        aw_heads.append(e_h * inv)                # (TQ, L*P)

    wout = wout_ref[...]                          # (C, C) bf16
    attn = jnp.zeros((TQ, C), jnp.float32)

    start = 0
    for l, (Hl, Wl) in enumerate(spatial_shapes):
        HW = Hl * Wl
        # per-cell (x, y) coordinates of this level, loaded once per level
        colx = coords_ref[0:1, start:start + HW]  # (1, HW)
        coly = coords_ref[1:2, start:start + HW]
        v_l = value_ref[0, start:start + HW, :]   # (HW, C) bf16

        for h in range(H):
            # fold the output projection into the value BEFORE sampling:
            # (HW, Dh) @ (Dh, C) once per (head, level)
            vp = jnp.dot(v_l[:, h * Dh:(h + 1) * Dh],
                         wout[h * Dh:(h + 1) * Dh, :],
                         preferred_element_type=jnp.float32)
            vp = vp.astype(jnp.bfloat16)          # (HW, C)

            # ONE combined sampling/attention matrix for all P points of (h, l).
            # Bilinear "hat" weights relu(1-|x-px|)*relu(1-|y-py|) are exactly
            # grid_sample(bilinear, align_corners=False, padding_mode='zeros'):
            # out-of-image neighbours simply have no column -> contribute zero.
            M = None
            for p in range(P):
                k = (h * L + l) * P + p
                wx = jnp.maximum(1.0 - jnp.abs(colx - px[:, k:k + 1]), 0.0)  # (TQ, HW)
                wy = jnp.maximum(1.0 - jnp.abs(coly - py[:, k:k + 1]), 0.0)
                a_k = aw_heads[h][:, l * P + p:l * P + p + 1]                # (TQ, 1)
                contrib = (a_k * wx) * wy
                M = contrib if M is None else M + contrib

            attn = attn + jnp.dot(M.astype(jnp.bfloat16), vp,
                                  preferred_element_type=jnp.float32)
        start += HW

    attn = attn + vec_ref[1:2, :]                 # output-projection bias (bout)

    # --- residual + LayerNorm1 (f32) ---
    x = src + attn
    mu = jnp.mean(x, axis=-1, keepdims=True)
    xc = x - mu
    var = jnp.mean(xc * xc, axis=-1, keepdims=True)
    x = xc * jax.lax.rsqrt(var + 1e-5) * vec_ref[2:3, :] + vec_ref[3:4, :]

    # --- FFN: linear1 -> relu -> linear2 (bf16 MXU operands, f32 accumulate) ---
    h1 = jnp.dot(x.astype(jnp.bfloat16), w1_ref[...],
                 preferred_element_type=jnp.float32) + b1_ref[...]
    h1 = jnp.maximum(h1, 0.0)
    y = jnp.dot(h1.astype(jnp.bfloat16), w2_ref[...],
                preferred_element_type=jnp.float32) + vec_ref[4:5, :]

    # --- residual + LayerNorm2 (f32) ---
    x = x + y
    mu = jnp.mean(x, axis=-1, keepdims=True)
    xc = x - mu
    var = jnp.mean(xc * xc, axis=-1, keepdims=True)
    x = xc * jax.lax.rsqrt(var + 1e-5) * vec_ref[5:6, :] + vec_ref[6:7, :]

    out_ref[0] = x.astype(out_ref.dtype)


def _pick_tile(n, max_tile):
    """Largest divisor of n that is <= max_tile and a multiple of 8 (else n)."""
    for d in range(min(n, max_tile), 0, -1):
        if n % d == 0 and d % 8 == 0:
            return d
    return n


# ----------------------------------------------------------------------------
# One encoder layer: two pallas_calls, grid over (batch, tiles)
# ----------------------------------------------------------------------------
def encoder_layer_apply(src, pos, refx_pix, refy_pix, coords, mask, params,
                        spatial_shapes, n_heads, n_points):
    B, Len, C = src.shape
    L = len(spatial_shapes)
    H, P = n_heads, n_points
    HLP = H * L * P
    (wv, bv, wo, bo, wa, ba, wout, bout, g1, be1, w1, b1, w2, b2, g2, be2) = params
    F = w1.shape[1]

    # ---- repack parameters for the kernel (tiny, done on host/XLA side) ----
    wo_r = wo.reshape(C, HLP, 2)                  # split interleaved (x, y) columns
    bo_r = bo.reshape(1, HLP, 2)
    woa = jnp.concatenate([wo_r[..., 0], wo_r[..., 1], wa], axis=1)   # (C, 3*HLP)
    boa = jnp.concatenate([bo_r[..., 0], bo_r[..., 1], ba], axis=1)   # (1, 3*HLP)
    vec = jnp.concatenate([bv, bout, g1, be1, b2, g2, be2,
                           jnp.zeros_like(bv)], axis=0)               # (8, C)
    wout_bf = wout.astype(jnp.bfloat16)
    w1_bf = w1.astype(jnp.bfloat16)
    w2_bf = w2.astype(jnp.bfloat16)

    # ---- stage 1: masked value projection (kept in bf16) ----
    TV = _pick_tile(Len, 512)
    value = pl.pallas_call(
        _value_proj_kernel,
        out_shape=jax.ShapeDtypeStruct((B, Len, C), jnp.bfloat16),
        grid=(B, Len // TV),
        in_specs=[
            pl.BlockSpec((1, TV, C), lambda b, t: (b, t, 0)),
            pl.BlockSpec((1, TV, 1), lambda b, t: (b, t, 0)),
            pl.BlockSpec((C, C), lambda b, t: (0, 0)),
            pl.BlockSpec((8, C), lambda b, t: (0, 0)),
        ],
        out_specs=pl.BlockSpec((1, TV, C), lambda b, t: (b, t, 0)),
        compiler_params=pltpu.CompilerParams(
            dimension_semantics=("parallel", "parallel")),
    )(src, mask, wv, vec)

    # ---- stage 2: deformable attention + add&LN + FFN + add&LN ----
    TQ = _pick_tile(Len, 256)
    kernel = functools.partial(_encoder_layer_kernel,
                               spatial_shapes=tuple(spatial_shapes),
                               n_heads=n_heads, n_points=n_points)
    return pl.pallas_call(
        kernel,
        out_shape=jax.ShapeDtypeStruct((B, Len, C), src.dtype),
        grid=(B, Len // TQ),
        in_specs=[
            pl.BlockSpec((1, TQ, C), lambda b, q: (b, q, 0)),      # src
            pl.BlockSpec((1, TQ, C), lambda b, q: (b, q, 0)),      # pos
            pl.BlockSpec((1, TQ, HLP), lambda b, q: (b, q, 0)),    # ref x (pixel units)
            pl.BlockSpec((1, TQ, HLP), lambda b, q: (b, q, 0)),    # ref y (pixel units)
            pl.BlockSpec((1, Len, C), lambda b, q: (b, 0, 0)),     # value (full sequence)
            pl.BlockSpec((2, Len), lambda b, q: (0, 0)),           # per-cell (x,y) coords
            pl.BlockSpec((C, 3 * HLP), lambda b, q: (0, 0)),       # fused offset/attn weight
            pl.BlockSpec((1, 3 * HLP), lambda b, q: (0, 0)),       # fused offset/attn bias
            pl.BlockSpec((C, C), lambda b, q: (0, 0)),             # wout (bf16)
            pl.BlockSpec((8, C), lambda b, q: (0, 0)),             # packed bias/LN slab
            pl.BlockSpec((C, F), lambda b, q: (0, 0)),             # w1 (bf16)
            pl.BlockSpec((1, F), lambda b, q: (0, 0)),             # b1
            pl.BlockSpec((F, C), lambda b, q: (0, 0)),             # w2 (bf16)
        ],
        out_specs=pl.BlockSpec((1, TQ, C), lambda b, q: (b, q, 0)),
        compiler_params=pltpu.CompilerParams(
            dimension_semantics=("parallel", "parallel")),
    )(src, pos, refx_pix, refy_pix, value, coords,
      woa, boa, wout_bf, vec, w1_bf, b1, w2_bf)


def get_reference_points(spatial_shapes, valid_ratios):
    # valid_ratios: (B, L, 2)
    ref_list = []
    for lvl, (H_, W_) in enumerate(spatial_shapes):
        ref_y, ref_x = jnp.meshgrid(
            jnp.linspace(0.5, H_ - 0.5, H_, dtype=jnp.float32),
            jnp.linspace(0.5, W_ - 0.5, W_, dtype=jnp.float32),
            indexing="ij")
        ref_y = ref_y.reshape(-1)[None] / (valid_ratios[:, None, lvl, 1] * H_)
        ref_x = ref_x.reshape(-1)[None] / (valid_ratios[:, None, lvl, 0] * W_)
        ref = jnp.stack((ref_x, ref_y), -1)                         # (B, HW, 2)
        ref_list.append(ref)
    reference_points = jnp.concatenate(ref_list, 1)                 # (B, Len, 2)
    reference_points = reference_points[:, :, None] * valid_ratios[:, None]  # (B, Len, L, 2)
    return reference_points


def deformable_transformer_encoder(src, spatial_shapes, valid_ratios, layer_params,
                                   pos=None, padding_mask=None,
                                   n_heads=4, n_points=2):
    B, Len, C = src.shape
    L = len(spatial_shapes)
    H, P = n_heads, n_points
    HLP = H * L * P

    ref = get_reference_points(spatial_shapes, valid_ratios)        # (B, Len, L, 2)

    # Expand reference points to one column per (head, level, point) and convert to
    # grid_sample pixel coordinates: ref*size - 0.5 (so raw offsets add directly).
    lvl_of_col = np.array([(k // P) % L for k in range(HLP)], dtype=np.int32)
    w_of_col = np.array([spatial_shapes[l][1] for l in lvl_of_col], dtype=np.float32)
    h_of_col = np.array([spatial_shapes[l][0] for l in lvl_of_col], dtype=np.float32)
    refx_pix = ref[..., 0][..., lvl_of_col] * w_of_col - 0.5        # (B, Len, HLP)
    refy_pix = ref[..., 1][..., lvl_of_col] * h_of_col - 0.5

    # per-cell integer (x, y) coordinates within each level, flattened like src
    coords = np.concatenate(
        [np.stack([np.tile(np.arange(Wl, dtype=np.float32), Hl),
                   np.repeat(np.arange(Hl, dtype=np.float32), Wl)], axis=0)
         for (Hl, Wl) in spatial_shapes], axis=1)                   # (2, Len)
    coords = jnp.asarray(coords)

    if padding_mask is None:
        mask = jnp.zeros((B, Len, 1), jnp.float32)
    else:
        mask = padding_mask.astype(jnp.float32)[..., None]
    if pos is None:
        pos = jnp.zeros_like(src)

    output = src
    for params in layer_params:                                     # _get_clones loop
        output = encoder_layer_apply(output, pos, refx_pix, refy_pix, coords, mask,
                                     params, spatial_shapes, n_heads, n_points)
    return output


# ----------------------------------------------------------------------------
# Deterministic parameter initialization (synthetic weights, PyTorch layout)
# ----------------------------------------------------------------------------
def init_layer_params(key, C, d_ffn, n_heads, n_levels, n_points):
    import math
    ks = jax.random.split(key, 6)
    s = 0.02
    HLP = n_heads * n_levels * n_points
    wv = jax.random.normal(ks[0], (C, C), jnp.float32) * s
    bv = jnp.zeros((1, C), jnp.float32)
    wo = jax.random.normal(ks[1], (C, HLP * 2), jnp.float32) * s
    # grid-style offset bias, as in MSDeformAttn._reset_parameters
    thetas = jnp.arange(n_heads, dtype=jnp.float32) * (2.0 * math.pi / n_heads)
    grid = jnp.stack([jnp.cos(thetas), jnp.sin(thetas)], -1)
    grid = grid / jnp.max(jnp.abs(grid), axis=-1, keepdims=True)
    grid = jnp.tile(grid[:, None, None, :], (1, n_levels, n_points, 1))
    grid = grid * jnp.arange(1, n_points + 1, dtype=jnp.float32).reshape(1, 1, n_points, 1)
    bo = grid.reshape(1, HLP * 2)
    wa = jax.random.normal(ks[2], (C, HLP), jnp.float32) * s
    ba = jnp.zeros((1, HLP), jnp.float32)
    wout = jax.random.normal(ks[3], (C, C), jnp.float32) * s
    bout = jnp.zeros((1, C), jnp.float32)
    g1 = jnp.ones((1, C), jnp.float32)
    be1 = jnp.zeros((1, C), jnp.float32)
    w1 = jax.random.normal(ks[4], (C, d_ffn), jnp.float32) * s
    b1 = jnp.zeros((1, d_ffn), jnp.float32)
    w2 = jax.random.normal(ks[5], (d_ffn, C), jnp.float32) * s
    b2 = jnp.zeros((1, C), jnp.float32)
    g2 = jnp.ones((1, C), jnp.float32)
    be2 = jnp.zeros((1, C), jnp.float32)
    return [wv, bv, wo, bo, wa, ba, wout, bout, g1, be1, w1, b1, w2, b2, g2, be2]


if __name__ == "__main__":
    key = jax.random.PRNGKey(0)
    B, C, d_ffn = 2, 32, 64
    n_heads, n_points, num_layers = 4, 2, 2
    spatial_shapes = ((16, 16), (8, 8))           # 2 feature levels
    L = len(spatial_shapes)
    Len = sum(h * w for h, w in spatial_shapes)   # 320

    k_src, k_pos, k_vr, k_mask, k_par = jax.random.split(key, 5)
    src = jax.random.normal(k_src, (B, Len, C), jnp.float32)
    pos = jax.random.normal(k_pos, (B, Len, C), jnp.float32) * 0.1
    valid_ratios = jax.random.uniform(k_vr, (B, L, 2), jnp.float32, 0.8, 1.0)
    padding_mask = jax.random.uniform(k_mask, (B, Len)) < 0.05      # a few padded tokens

    layer_keys = jax.random.split(k_par, num_layers)
    layer_params = [init_layer_params(k, C, d_ffn, n_heads, L, n_points)
                    for k in layer_keys]

    out = deformable_transformer_encoder(src, spatial_shapes, valid_ratios, layer_params,
                                         pos=pos, padding_mask=padding_mask,
                                         n_heads=n_heads, n_points=n_points)
    out = jax.block_until_ready(out)
    assert out.shape == (B, Len, C)
    assert bool(jnp.all(jnp.isfinite(out)))
    print("KERNEL_OK")
</pallas_src>

<mosaic_0001>
module attributes {stable_mosaic.version = 11 : i64} {
  func.func @_value_proj_kernel(%arg0: i32, %arg1: i32, %arg2: memref<1x320x32xf32, #tpu.memory_space<vmem>>, %arg3: memref<1x320x1xf32, #tpu.memory_space<vmem>>, %arg4: memref<32x32xf32, #tpu.memory_space<vmem>>, %arg5: memref<8x32xf32, #tpu.memory_space<vmem>>, %arg6: memref<1x320x32xbf16, #tpu.memory_space<vmem>>) attributes {dimension_semantics = [#tpu.dimension_semantics<parallel>, #tpu.dimension_semantics<parallel>], iteration_bounds = array<i64: 2, 1>, scalar_prefetch = 0 : i64, scratch_operands = 0 : i64, tpu.core_type = #tpu.core_type<tc>, window_params = [{transform_indices = @transform_0, window_bounds = array<i64: 1, 320, 32>}, {transform_indices = @transform_1, window_bounds = array<i64: 1, 320, 1>}, {pipeline_mode = #tpu.pipeline_mode<synchronous>, transform_indices = @transform_2, window_bounds = array<i64: 32, 32>}, {pipeline_mode = #tpu.pipeline_mode<synchronous>, transform_indices = @transform_3, window_bounds = array<i64: 8, 32>}, {transform_indices = @transform_4, window_bounds = array<i64: 1, 320, 32>}]} {
    %c0 = arith.constant 0 : index
    %c0_0 = arith.constant 0 : index
    %c0_1 = arith.constant 0 : index
    %0 = vector.load %arg2[%c0, %c0_0, %c0_1] : memref<1x320x32xf32, #tpu.memory_space<vmem>>, vector<1x320x32xf32>
    %1 = vector.shape_cast %0 : vector<1x320x32xf32> to vector<320x32xf32>
    %c0_2 = arith.constant 0 : index
    %c0_3 = arith.constant 0 : index
    %2 = vector.load %arg4[%c0_2, %c0_3] : memref<32x32xf32, #tpu.memory_space<vmem>>, vector<32x32xf32>
    %cst = arith.constant dense<0.000000e+00> : vector<320x32xf32>
    %3 = tpu.matmul %1, %2, %cst {dimension_numbers = #tpu.dot_dimension_numbers<[1], [0], [0], [1], [0, 0, 1, 1], [], []>} : vector<320x32xf32>, vector<32x32xf32>, vector<320x32xf32> -> vector<320x32xf32>
    %c0_4 = arith.constant 0 : index
    %c0_5 = arith.constant 0 : index
    %4 = vector.load %arg5[%c0_4, %c0_5] : memref<8x32xf32, #tpu.memory_space<vmem>>, vector<1x32xf32>
    %5 = vector.broadcast %4 : vector<1x32xf32> to vector<320x32xf32>
    %6 = arith.addf %3, %5 : vector<320x32xf32>
    %c0_6 = arith.constant 0 : index
    %c0_7 = arith.constant 0 : index
    %c0_8 = arith.constant 0 : index
    %7 = vector.load %arg3[%c0_6, %c0_7, %c0_8] : memref<1x320x1xf32, #tpu.memory_space<vmem>>, vector<1x320x1xf32>
    %8 = vector.shape_cast %7 : vector<1x320x1xf32> to vector<320x1xf32>
    %cst_9 = arith.constant 1.000000e+00 : f32
    %9 = vector.broadcast %cst_9 : f32 to vector<320x1xf32>
    %10 = arith.subf %9, %8 : vector<320x1xf32>
    %11 = vector.broadcast %10 : vector<320x1xf32> to vector<320x32xf32>
    %12 = arith.mulf %6, %11 : vector<320x32xf32>
    %13 = arith.truncf %12 : vector<320x32xf32> to vector<320x32xbf16>
    %c0_10 = arith.constant 0 : index
    %c0_11 = arith.constant 0 : index
    %c0_12 = arith.constant 0 : index
    %14 = vector.load %arg6[%c0_10, %c0_11, %c0_12] : memref<1x320x32xbf16, #tpu.memory_space<vmem>>, vector<1x320x32xbf16>
    %15 = vector.shape_cast %14 : vector<1x320x32xbf16> to vector<320x32xbf16>
    %16 = vector.shape_cast %13 : vector<320x32xbf16> to vector<1x320x32xbf16>
    tpu.vector_store %arg6[%c0_10, %c0_11, %c0_12], %16 {strides = array<i32>} : memref<1x320x32xbf16, #tpu.memory_space<vmem>>, vector<1x320x32xbf16>,
    return
  }
  func.func @transform_0(%arg0: i32, %arg1: i32) -> (i32, i32, i32) {
    %c0_i32 = arith.constant 0 : i32
    %c0_i32_0 = arith.constant 0 : i32
    return %arg0, %arg1, %c0_i32 : i32, i32, i32
  }
  func.func @transform_1(%arg0: i32, %arg1: i32) -> (i32, i32, i32) {
    %c0_i32 = arith.constant 0 : i32
    %c0_i32_0 = arith.constant 0 : i32
    return %arg0, %arg1, %c0_i32 : i32, i32, i32
  }
  func.func @transform_2(%arg0: i32, %arg1: i32) -> (i32, i32) {
    %c0_i32 = arith.constant 0 : i32
    %c0_i32_0 = arith.constant 0 : i32
    %c0_i32_1 = arith.constant 0 : i32
    return %c0_i32, %c0_i32_0 : i32, i32
  }
  func.func @transform_3(%arg0: i32, %arg1: i32) -> (i32, i32) {
    %c0_i32 = arith.constant 0 : i32
    %c0_i32_0 = arith.constant 0 : i32
    %c0_i32_1 = arith.constant 0 : i32
    return %c0_i32, %c0_i32_0 : i32, i32
  }
  func.func @transform_4(%arg0: i32, %arg1: i32) -> (i32, i32, i32) {
    %c0_i32 = arith.constant 0 : i32
    %c0_i32_0 = arith.constant 0 : i32
    return %arg0, %arg1, %c0_i32 : i32, i32, i32
  }
}

</mosaic_0001>

<bundles_post_ra>
// kernel: tpu_custom_call.1
= control target key start
LH: loop header
LB: loop body
LE: loop exit
PB: predicated region body
PF: predicated region fallthrough
CT: control target
= control target key end

     0   :  { %s1668_s15 = smov 0   ;;  %s1670_s16 = smov 0   ;;  %s2046_s0 = inlined_call_operand.vmem [shape: f32[2,320,32], index: 0, kind: input, shape index: {}]   ;;  %s2047_s1 = inlined_call_operand.vmem [shape: f32[2,320,1], index: 1, kind: input, shape index: {}]   ;;  %s2048_s2 = inlined_call_operand.vmem [shape: f32[32,32], index: 2, kind: input, shape index: {}]   ;;  %s2049_s3 = inlined_call_operand.vmem [shape: f32[8,32], index: 3, kind: input, shape index: {}]   ;;  %s2050_s4 = inlined_call_operand.vmem [shape: bf16[2,320,32], index: 4, kind: output, shape index: {}]  }
   0x1   :  { %s1672_s17 = smov 0  }
   0x2 LB: > { %s26_s18 = sadd.s32 1, %s1636_s16  ;;  %p1338_p0 = scmp.ge.s32.totalorder %s1640_s17, 1  ;;  %s1640_s17 = sphi %s1672_s17, %s14_s17   ;;  %s1636_s16 = sphi %s1670_s16, %s2052_s16   ;;  %s1632_s15 = sphi %s1668_s15, %s2051_s15  }
   0x3   : > { %p28_p1 = scmp.ge.s32.totalorder %s26_s18, 2  ;;  %p200_p2 = scmp.lt.s32.totalorder %s1640_s17, 3 }
   0x5   : > { %s2054_s18 = smov (%p28_p1, %s26_s18), 0  ;;  %p201_p3 = pnand %p1338_p0, %p200_p2 }
   0x6   : > { %v313_v0 = vld [vmem:[%s2048_s2] sm:$0xff] (!%p201_p3)  ;;  %v314_v1 = vld [vmem:[%s2048_s2 + $0x8] sm:$0xff] (!%p201_p3)  ;;  %v315_v2 = vld [vmem:[%s2048_s2 + $0x10] sm:$0xff] (!%p201_p3)  ;;  %p244_p4 = scmp.lt.s32.totalorder (!%p201_p3), %s1632_s15, 1  ;;  %v1642_v5 = vmov (!%p201_p3), 0   ;;  %vm322_vm0 = vcmask (!%p201_p3), 261120  }
   0x7   : > { %204 = sbr.rel (%p201_p3) target bundleno = 279 (0x117), region = 36  ;;  %v1577_v3 = vpack.c.bf16 (!%p201_p3), %v314_v1, %v313_v0  ;;  %v316_v4 = vld [vmem:[%s2048_s2 + $0x18] sm:$0xff] (!%p201_p3)  ;;  %1617 = vset.pattern.permute.xlu1 (!%p201_p3), %v1642_v5  ;;  %1616 = vset.pattern.permute.xlu0 (!%p201_p3), %v1642_v5  ;;  %vm1188_vm1 = vcmask (!%p201_p3), 257024  }
   0x8   : > { %v1581_v6 = vpack.c.bf16 (!%p201_p3), %v316_v4, %v315_v2 }
   0x9   : > { %1578 = vmatprep.subr.bf16.mxu0 (!%p201_p3), %v1577_v3  ;;  %1585 = vmatprep.subr.bf16.mxu1 (!%p201_p3), %v1577_v3 }
   0xa   : > { %1580 = vmatpush3.bf16.msra.mxu0 (!%p201_p3), %v1577_v3  ;;  %1587 = vmatpush3.bf16.msra.mxu1 (!%p201_p3), %v1577_v3 }
   0xb   : > { %1582 = vmatprep.subr.bf16.mxu0 (!%p201_p3), %v1581_v6  ;;  %1586 = vmatprep.subr.bf16.mxu1 (!%p201_p3), %v1581_v6 }
   0xe   : > { %s2056_s15 = smov (!%p244_p4, %s1632_s15), 1  ;;  %1584 = vmatpush3.bf16.msra.mxu0 %v1581_v6  ;;  %1588 = vmatpush3.bf16.msra.mxu1 %v1581_v6 }
   0xf   : > { %s1589_s27 = smul.u32 320, %s2056_s15 }
  0x10   : > { %s1590_s10 = smul.u32 160, %s2056_s15 }
  0x11   : > { %s1704_s30 = scalar_lea.vmem %s2047_s1, %s1589_s27  ;;  %s1709_s7 = scalar_lea.vmem %s2046_s0, %s1589_s27 }
  0x12   : > { %v710_v7 = vld [vmem:[%s1704_s30 + $0x10] sm:$0xff]  ;;  %v708_v8 = vld [vmem:[%s1704_s30] sm:$0xff]  ;;  %v274_v13 = vld [vmem:[%s1709_s7 + $0x8] sm:$0xff]  ;;  %s1886_s13 = scalar_lea.vmem %s2050_s4, %s1590_s10 }
  0x13   : > { %v273_v9 = vld [vmem:[%s1709_s7] sm:$0xff]  ;;  %v750_v10 = vsub.f32 1.0, %v710_v7  ;;  %v748_v11 = vsub.f32 1.0, %v708_v8  ;;  %v294_v14 = vld [vmem:[%s1709_s7 + $0xa8] sm:$0xff]  ;;  %v711_v15 = vld [vmem:[%s1704_s30 + $0x18] sm:$0xff] }
  0x14   : > { %v293_v12 = vld [vmem:[%s1709_s7 + $0xa0] sm:$0xff]  ;;  %1517 = vmatprep.mubr.msk.f32.mxu0 %vm322_vm0, %v273_v9  ;;  %v709_v16 = vld [vmem:[%s1704_s30 + $0x8] sm:$0xff]  ;;  %v275_v17 = vld [vmem:[%s1709_s7 + $0x10] sm:$0xff]  ;;  %v751_v18 = vsub.f32 1.0, %v711_v15 }
  0x15   : > { %1547 = vmatprep.mubr.msk.f32.mxu1 %vm322_vm0, %v293_v12  ;;  %800 = vperm.xlu1 %1617, %v750_v10   ;;  %v749_v19 = vsub.f32 1.0, %v709_v16  ;;  %v295_v20 = vld [vmem:[%s1709_s7 + $0xb0] sm:$0xff]  ;;  %v713_v21 = vld [vmem:[%s1704_s30 + $0x28] sm:$0xff]  ;;  %v712_v22 = vld [vmem:[%s1704_s30 + $0x20] sm:$0xff] }
  0x16   : > { %790 = vperm.xlu0 %1616, %v748_v11   ;;  %1518 = vmatmul.mubr.msk.f32.vlgmr.msra.gmra.mrb[0].mxu0 %vm322_vm0, %v274_v13  ;;  %v276_v23 = vld [vmem:[%s1709_s7 + $0x18] sm:$0xff]  ;;  %v277_v25 = vld [vmem:[%s1709_s7 + $0x20] sm:$0xff]  ;;  %v753_v27 = vsub.f32 1.0, %v713_v21  ;;  %v752_v28 = vsub.f32 1.0, %v712_v22  ;;  %v714_v30 = vld [vmem:[%s1704_s30 + $0x30] sm:$0xff] }
  0x17   : > { %1548 = vmatmul.mubr.msk.f32.vlgmr.msra.gmra.mrb[0].mxu1 %vm322_vm0, %v294_v14  ;;  %1520 = vmatprep.mubr.msk.f32.mxu0 %vm322_vm0, %v275_v17  ;;  %v296_v24 = vld [vmem:[%s1709_s7 + $0xb8] sm:$0xff]  ;;  %v297_v26 = vld [vmem:[%s1709_s7 + $0xc0] sm:$0xff]  ;;  %v278_v31 = vld [vmem:[%s1709_s7 + $0x28] sm:$0xff]  ;;  %v754_v36 = vsub.f32 1.0, %v714_v30 }
  0x18   : > { %1550 = vmatprep.mubr.msk.f32.mxu1 %vm322_vm0, %v295_v20  ;;  %v715_v29 = vld [vmem:[%s1704_s30 + $0x38] sm:$0xff]  ;;  %v298_v32 = vld [vmem:[%s1709_s7 + $0xc8] sm:$0xff]  ;;  %v279_v33 = vld [vmem:[%s1709_s7 + $0x30] sm:$0xff] }
  0x19   : > { %805 = vperm.xlu1 %1617, %v751_v18   ;;  %v299_v34 = vld [vmem:[%s1709_s7 + $0xd0] sm:$0xff]  ;;  %v755_v35 = vsub.f32 1.0, %v715_v29  ;;  %v717_v37 = vld [vmem:[%s1704_s30 + $0x48] sm:$0xff]  ;;  %v716_v38 = vld [vmem:[%s1704_s30 + $0x40] sm:$0xff] }
  0x1a   : > { %795 = vperm.xlu0 %1616, %v749_v19   ;;  %1521 = vmatmul.mubr.msk.f32.gmra.mrb[2].mxu0 %vm322_vm0, %v276_v23  ;;  %v280_v39 = vld [vmem:[%s1709_s7 + $0x38] sm:$0xff]  ;;  %v281_v41 = vld [vmem:[%s1709_s7 + $0x40] sm:$0xff]  ;;  %v757_v43 = vsub.f32 1.0, %v717_v37  ;;  %v756_v44 = vsub.f32 1.0, %v716_v38  ;;  %v718_v46 = vld [vmem:[%s1704_s30 + $0x50] sm:$0xff] }
  0x1b   : > { %1551 = vmatmul.mubr.msk.f32.gmra.mrb[2].mxu1 %vm322_vm0, %v296_v24  ;;  %1523 = vmatprep.mubr.msk.f32.mxu0 %vm322_vm0, %v277_v25  ;;  %v300_v40 = vld [vmem:[%s1709_s7 + $0xd8] sm:$0xff]  ;;  %v301_v42 = vld [vmem:[%s1709_s7 + $0xe0] sm:$0xff]  ;;  %v282_v47 = vld [vmem:[%s1709_s7 + $0x48] sm:$0xff]  ;;  %v758_v52 = vsub.f32 1.0, %v718_v46 }
  0x1c   : > { %1553 = vmatprep.mubr.msk.f32.mxu1 %vm322_vm0, %v297_v26  ;;  %v719_v45 = vld [vmem:[%s1704_s30 + $0x58] sm:$0xff]  ;;  %v302_v48 = vld [vmem:[%s1709_s7 + $0xe8] sm:$0xff]  ;;  %v283_v49 = vld [vmem:[%s1709_s7 + $0x50] sm:$0xff] }
  0x1d   : > { %815 = vperm.xlu1 %1617, %v753_v27   ;;  %v303_v50 = vld [vmem:[%s1709_s7 + $0xf0] sm:$0xff]  ;;  %v759_v51 = vsub.f32 1.0, %v719_v45  ;;  %v721_v53 = vld [vmem:[%s1704_s30 + $0x68] sm:$0xff]  ;;  %v720_v54 = vld [vmem:[%s1704_s30 + $0x60] sm:$0xff] }
  0x1e   : > { %810 = vperm.xlu0 %1616, %v752_v28   ;;  %1524 = vmatmul.mubr.msk.f32.gmra.mrb[4].mxu0 %vm322_vm0, %v278_v31  ;;  %v284_v55 = vld [vmem:[%s1709_s7 + $0x58] sm:$0xff]  ;;  %v285_v57 = vld [vmem:[%s1709_s7 + $0x60] sm:$0xff]  ;;  %v761_v59 = vsub.f32 1.0, %v721_v53  ;;  %v760_v60 = vsub.f32 1.0, %v720_v54  ;;  %v722_v62 = vld [vmem:[%s1704_s30 + $0x70] sm:$0xff] }
  0x1f   : > { %1554 = vmatmul.mubr.msk.f32.gmra.mrb[4].mxu1 %vm322_vm0, %v298_v32  ;;  %1526 = vmatprep.mubr.msk.f32.mxu0 %vm322_vm0, %v279_v33  ;;  %v304_v56 = vld [vmem:[%s1709_s7 + $0xf8] sm:$0xff]  ;;  %v305_v58 = vld [vmem:[%s1709_s7 + $0x100] sm:$0xff]  ;;  %v286_v63 = vld [vmem:[%s1709_s7 + $0x68] sm:$0xff]  ;;  %v762_v4 = vsub.f32 1.0, %v722_v62 }
  0x20   : > { %1556 = vmatprep.mubr.msk.f32.mxu1 %vm322_vm0, %v299_v34  ;;  %v723_v61 = vld [vmem:[%s1704_s30 + $0x78] sm:$0xff]  ;;  %v306_v0 = vld [vmem:[%s1709_s7 + $0x108] sm:$0xff]  ;;  %v287_v1 = vld [vmem:[%s1709_s7 + $0x70] sm:$0xff] }
  0x21   : > { %825 = vperm.xlu1 %1617, %v755_v35   ;;  %v307_v2 = vld [vmem:[%s1709_s7 + $0x110] sm:$0xff]  ;;  %v763_v3 = vsub.f32 1.0, %v723_v61  ;;  %v725_v5 = vld [vmem:[%s1704_s30 + $0x88] sm:$0xff]  ;;  %v724_v6 = vld [vmem:[%s1704_s30 + $0x80] sm:$0xff] }
  0x22   : > { %820 = vperm.xlu0 %1616, %v754_v36   ;;  %1527 = vmatmul.mubr.msk.f32.gmra.mrb[6].mxu0 %vm322_vm0, %v280_v39  ;;  %v288_v7 = vld [vmem:[%s1709_s7 + $0x78] sm:$0xff]  ;;  %v289_v9 = vld [vmem:[%s1709_s7 + $0x80] sm:$0xff]  ;;  %v765_v11 = vsub.f32 1.0, %v725_v5  ;;  %v764_v12 = vsub.f32 1.0, %v724_v6  ;;  %v726_v14 = vld [vmem:[%s1704_s30 + $0x90] sm:$0xff] }
  0x23   : > { %1557 = vmatmul.mubr.msk.f32.gmra.mrb[6].mxu1 %vm322_vm0, %v300_v40  ;;  %1529 = vmatprep.mubr.msk.f32.mxu0 %vm322_vm0, %v281_v41  ;;  %v308_v8 = vld [vmem:[%s1709_s7 + $0x118] sm:$0xff]  ;;  %v309_v10 = vld [vmem:[%s1709_s7 + $0x120] sm:$0xff]  ;;  %v290_v15 = vld [vmem:[%s1709_s7 + $0x88] sm:$0xff]  ;;  %v766_v20 = vsub.f32 1.0, %v726_v14 }
  0x24   : > { %1559 = vmatprep.mubr.msk.f32.mxu1 %vm322_vm0, %v301_v42  ;;  %v727_v13 = vld [vmem:[%s1704_s30 + $0x98] sm:$0xff]  ;;  %v310_v16 = vld [vmem:[%s1709_s7 + $0x128] sm:$0xff]  ;;  %v291_v17 = vld [vmem:[%s1709_s7 + $0x90] sm:$0xff] }
  0x25   : > { %835 = vperm.xlu1 %1617, %v757_v43   ;;  %v311_v18 = vld [vmem:[%s1709_s7 + $0x130] sm:$0xff]  ;;  %v767_v19 = vsub.f32 1.0, %v727_v13  ;;  %v729_v21 = vld [vmem:[%s1704_s30 + $0xa8] sm:$0xff]  ;;  %v728_v22 = vld [vmem:[%s1704_s30 + $0xa0] sm:$0xff] }
  0x26   : > { %830 = vperm.xlu0 %1616, %v756_v44   ;;  %1530 = vmatmul.mubr.msk.f32.gmra.mrb[8].mxu0 %vm322_vm0, %v282_v47  ;;  %v292_v23 = vld [vmem:[%s1709_s7 + $0x98] sm:$0xff]  ;;  %v769_v25 = vsub.f32 1.0, %v729_v21  ;;  %v768_v26 = vsub.f32 1.0, %v728_v22  ;;  %v730_v28 = vld [vmem:[%s1704_s30 + $0xb0] sm:$0xff]  ;;  %v733_v31 = vld [vmem:[%s1704_s30 + $0xc8] sm:$0xff] }
  0x27   : > { %1560 = vmatmul.mubr.msk.f32.gmra.mrb[8].mxu1 %vm322_vm0, %v302_v48  ;;  %1532 = vmatprep.mubr.msk.f32.mxu0 %vm322_vm0, %v283_v49  ;;  %v312_v24 = vld [vmem:[%s1709_s7 + $0x138] sm:$0xff]  ;;  %v770_v30 = vsub.f32 1.0, %v730_v28  ;;  %v732_v32 = vld [vmem:[%s1704_s30 + $0xc0] sm:$0xff]  ;;  %v773_v33 = vsub.f32 1.0, %v733_v31  ;;  %v734_v36 = vld [vmem:[%s1704_s30 + $0xd0] sm:$0xff] }
  0x28   : > { %1562 = vmatprep.mubr.msk.f32.mxu1 %vm322_vm0, %v303_v50  ;;  %v731_v27 = vld [vmem:[%s1704_s30 + $0xb8] sm:$0xff]  ;;  %v772_v34 = vsub.f32 1.0, %v732_v32  ;;  %v774_v38 = vsub.f32 1.0, %v734_v36  ;;  %v737_v39 = vld [vmem:[%s1704_s30 + $0xe8] sm:$0xff]  ;;  %v736_v40 = vld [vmem:[%s1704_s30 + $0xe0] sm:$0xff] }
  0x29   : > { %845 = vperm.xlu1 %1617, %v759_v51   ;;  %v771_v29 = vsub.f32 1.0, %v731_v27  ;;  %v735_v35 = vld [vmem:[%s1704_s30 + $0xd8] sm:$0xff]  ;;  %v777_v41 = vsub.f32 1.0, %v737_v39  ;;  %v776_v42 = vsub.f32 1.0, %v736_v40  ;;  %v738_v44 = vld [vmem:[%s1704_s30 + $0xf0] sm:$0xff]  ;;  %v741_v47 = vld [vmem:[%s1704_s30 + $0x108] sm:$0xff] }
  0x2a   : > { %840 = vperm.xlu0 %1616, %v758_v52   ;;  %1533 = vmatmul.mubr.msk.f32.gmra.mrb[10].mxu0 %vm322_vm0, %v284_v55  ;;  %v775_v37 = vsub.f32 1.0, %v735_v35  ;;  %v739_v43 = vld [vmem:[%s1704_s30 + $0xf8] sm:$0xff]  ;;  %v778_v46 = vsub.f32 1.0, %v738_v44  ;;  %v740_v48 = vld [vmem:[%s1704_s30 + $0x100] sm:$0xff]  ;;  %v781_v49 = vsub.f32 1.0, %v741_v47  ;;  %v742_v52 = vld [vmem:[%s1704_s30 + $0x110] sm:$0xff] }
  0x2b   : > { %1563 = vmatmul.mubr.msk.f32.gmra.mrb[10].mxu1 %vm322_vm0, %v304_v56  ;;  %1535 = vmatprep.mubr.msk.f32.mxu0 %vm322_vm0, %v285_v57  ;;  %v779_v45 = vsub.f32 1.0, %v739_v43  ;;  %v780_v50 = vsub.f32 1.0, %v740_v48  ;;  %v743_v51 = vld [vmem:[%s1704_s30 + $0x118] sm:$0xff]  ;;  %v782_v54 = vsub.f32 1.0, %v742_v52  ;;  %v745_v55 = vld [vmem:[%s1704_s30 + $0x128] sm:$0xff]  ;;  %v744_v56 = vld [vmem:[%s1704_s30 + $0x120] sm:$0xff] }
  0x2c   : > { %1565 = vmatprep.mubr.msk.f32.mxu1 %vm322_vm0, %v305_v58  ;;  %v783_v53 = vsub.f32 1.0, %v743_v51  ;;  %v785_v57 = vsub.f32 1.0, %v745_v55  ;;  %v784_v58 = vsub.f32 1.0, %v744_v56  ;;  %v1872_v27 = vld [vmem:[%s2049_s3] ss:$0 sm:$0xff] }
  0x2d   : > { %855 = vperm.xlu1 %1617, %v761_v59   ;;  %v747_v59 = vld [vmem:[%s1704_s30 + $0x138] sm:$0xff] }
  0x2e   : > { %850 = vperm.xlu0 %1616, %v760_v60   ;;  %1536 = vmatmul.mubr.msk.f32.gmra.mrb[12].mxu0 %vm322_vm0, %v286_v63  ;;  %v746_v60 = vld [vmem:[%s1704_s30 + $0x130] sm:$0xff]  ;;  %v787_v61 = vsub.f32 1.0, %v747_v59 }
  0x2f   : > { %1566 = vmatmul.mubr.msk.f32.gmra.mrb[12].mxu1 %vm322_vm0, %v306_v0  ;;  %1538 = vmatprep.mubr.msk.f32.mxu0 %vm322_vm0, %v287_v1  ;;  %v786_v62 = vsub.f32 1.0, %v746_v60 }
  0x30   : > { %1568 = vmatprep.mubr.msk.f32.mxu1 %vm322_vm0, %v307_v2 }
  0x31   : > { %865 = vperm.xlu1 %1617, %v763_v3  }
  0x32   : > { %860 = vperm.xlu0 %1616, %v762_v4   ;;  %1539 = vmatmul.mubr.msk.f32.gmra.mrb[14].mxu0 %vm322_vm0, %v288_v7 }
  0x33   : > { %1569 = vmatmul.mubr.msk.f32.gmra.mrb[14].mxu1 %vm322_vm0, %v308_v8  ;;  %1541 = vmatprep.mubr.msk.f32.mxu0 %vm322_vm0, %v289_v9 }
  0x34   : > { %1571 = vmatprep.mubr.msk.f32.mxu1 %vm322_vm0, %v309_v10 }
  0x35   : > { %875 = vperm.xlu1 %1617, %v765_v11  }
  0x36   : > { %870 = vperm.xlu0 %1616, %v764_v12   ;;  %1542 = vmatmul.mubr.msk.f32.gmra.mrb[16].mxu0 %vm322_vm0, %v290_v15 }
  0x37   : > { %1572 = vmatmul.mubr.msk.f32.gmra.mrb[16].mxu1 %vm322_vm0, %v310_v16  ;;  %1544 = vmatprep.mubr.msk.f32.mxu0 %vm322_vm0, %v291_v17 }
  0x38   : > { %1574 = vmatprep.mubr.msk.f32.mxu1 %vm322_vm0, %v311_v18 }
  0x39   : > { %885 = vperm.xlu1 %1617, %v767_v19  }
  0x3a   : > { %880 = vperm.xlu0 %1616, %v766_v20   ;;  %1545 = vmatmul.mubr.msk.f32.gmra.mrb[18].mxu0 %vm322_vm0, %v292_v23 }
  0x3b   : > { %1575 = vmatmul.mubr.msk.f32.gmra.mrb[18].mxu1 %vm322_vm0, %v312_v24 }
  0x3d   : > { %895 = vperm.xlu1 %1617, %v769_v25  }
  0x3e   : > { %890 = vperm.xlu0 %1616, %v768_v26  }
  0x41   : > { %905 = vperm.xlu1 %1617, %v771_v29  }
  0x42   : > { %900 = vperm.xlu0 %1616, %v770_v30  }
  0x45   : > { %915 = vperm.xlu1 %1617, %v773_v33  }
  0x46   : > { %910 = vperm.xlu0 %1616, %v772_v34  }
  0x49   : > { %925 = vperm.xlu1 %1617, %v775_v37  }
  0x4a   : > { %920 = vperm.xlu0 %1616, %v774_v38  }
  0x4d   : > { %935 = vperm.xlu1 %1617, %v777_v41  }
  0x4e   : > { %930 = vperm.xlu0 %1616, %v776_v42  }
  0x51   : > { %945 = vperm.xlu1 %1617, %v779_v45  }
  0x52   : > { %940 = vperm.xlu0 %1616, %v778_v46  }
  0x55   : > { %955 = vperm.xlu1 %1617, %v781_v49  }
  0x56   : > { %950 = vperm.xlu0 %1616, %v780_v50  }
  0x59   : > { %965 = vperm.xlu1 %1617, %v783_v53  }
  0x5a   : > { %960 = vperm.xlu0 %1616, %v782_v54  }
  0x5d   : > { %975 = vperm.xlu1 %1617, %v785_v57  }
  0x5e   : > { %970 = vperm.xlu0 %1616, %v784_v58  }
  0x61   : > { %985 = vperm.xlu1 %1617, %v787_v61  }
  0x62   : > { %980 = vperm.xlu0 %1616, %v786_v62  }
  0x94   : > { %v1831_v63 = vpop.permute.xlu1 %800 }
  0x95   : > { %v791_v0 = vpop.permute.xlu0 %790 }
  0x98   : > { %v806_v1 = vpop.permute.xlu1 %805 }
  0x99   : > { %v796_v2 = vpop.permute.xlu0 %795 }
  0x9c   : > { %v1833_v3 = vpop.permute.xlu1 %815 }
  0x9d   : > { %v1835_v4 = vpop.permute.xlu0 %810 }
  0xa0   : > { %v1837_v5 = vpop.permute.xlu1 %825 }
  0xa1   : > { %v1839_v6 = vpop.permute.xlu0 %820 }
  0xa4   : > { %v1841_v7 = vpop.permute.xlu1 %835 }
  0xa5   : > { %v1843_v8 = vpop.permute.xlu0 %830 }
  0xa8   : > { %v1845_v9 = vpop.permute.xlu1 %845 }
  0xa9   : > { %v1847_v10 = vpop.permute.xlu0 %840 }
  0xac   : > { %v1849_v11 = vpop.permute.xlu1 %855 }
  0xad   : > { %v1851_v12 = vpop.permute.xlu0 %850 }
  0xb0   : > { %v1853_v13 = vpop.permute.xlu1 %865 }
  0xb1   : > { %v1855_v14 = vpop.permute.xlu0 %860 }
  0xb4   : > { %v1857_v15 = vpop.permute.xlu1 %875 }
  0xb5   : > { %v1859_v16 = vpop.permute.xlu0 %870 }
  0xb8   : > { %v1861_v17 = vpop.permute.xlu1 %885 }
  0xb9   : > { %v1863_v18 = vpop.permute.xlu0 %880 }
  0xbc   : > { %v896_v19 = vpop.permute.xlu1 %895 }
  0xbd   : > { %v891_v20 = vpop.permute.xlu0 %890 }
  0xc0   : > { %v906_v21 = vpop.permute.xlu1 %905 }
  0xc1   : > { %v901_v22 = vpop.permute.xlu0 %900 }
  0xc4   : > { %v916_v23 = vpop.permute.xlu1 %915 }
  0xc5   : > { %v911_v24 = vpop.permute.xlu0 %910 }
  0xc8   : > { %v1865_v25 = vpop.permute.xlu1 %925 }
  0xc9   : > { %v1867_v26 = vpop.permute.xlu0 %920 }
  0xcc   : > { %v1874_v28 = vpop.permute.xlu1 %935 }
  0xcd   : > { %v1876_v29 = vpop.permute.xlu0 %930 }
  0xd0   : > { %v1892_v54 = vpop.permute.xlu1 %945 }
  0xd1   : > { %v1894_v55 = vpop.permute.xlu0 %940 }
  0xe9   : > { %v1519_v30 = vpop.f32.mrb[0].mxu0 }
  0xea   : > { %v1549_v31 = vpop.f32.mrb[0].mxu1  ;;  %v515_v32 = vadd.f32 %v1519_v30, %v1872_v27  ;;  %v509_v34 = vpop.f32.mrb[1].mxu0 }
  0xeb   : > { %v615_v33 = vadd.f32 %v1549_v31, %v1872_v27  ;;  %v609_v35 = vpop.f32.mrb[1].mxu1  ;;  %v510_v36 = vadd.f32 %v1872_v27, %v509_v34 }
  0xec   : > { %v610_v37 = vadd.f32 %v1872_v27, %v609_v35  ;;  %v989_v38 = vmul.f32 %v796_v2, %v515_v32 }
  0xed   : > { %v1009_v39 = vmul.f32 %v896_v19, %v615_v33  ;;  %v988_v40 = vmul.f32 %v791_v0, %v510_v36  ;;  %v1522_v42 = vpop.f32.mrb[2].mxu0 }
  0xee   : > { %v1008_v41 = vmul.f32 %v891_v20, %v610_v37  ;;  %v1552_v43 = vpop.f32.mrb[2].mxu1  ;;  %v1426_v44 = vpack.c.bf16 %v989_v38, %v989_v38  ;;  %v525_v46 = vadd.f32 %v1522_v42, %v1872_v27  ;;  %v519_v48 = vpop.f32.mrb[3].mxu0 }
  0xef   : > { %v1446_v45 = vpack.c.bf16 %v1009_v39, %v1009_v39  ;;  %v625_v47 = vadd.f32 %v1552_v43, %v1872_v27  ;;  %v619_v49 = vpop.f32.mrb[3].mxu1  ;;  %v1425_v50 = vpack.c.bf16 %v988_v40, %v988_v40  ;;  %v520_v52 = vadd.f32 %v1872_v27, %v519_v48 }
  0xf0   : > { %v1445_v51 = vpack.c.bf16 %v1008_v41, %v1008_v41  ;;  %v620_v53 = vadd.f32 %v1872_v27, %v619_v49  ;;  %1190 = vst.msk [vmem:[%s1886_s13 + $0x4] sm:$0xf] %vm1188_vm1, %v1426_v44  ;;  %v991_v56 = vmul.f32 %v806_v1, %v525_v46  ;;  %v1925_v44 = vpop.permute.xlu0 %950 }
  0xf1   : > { %1210 = vst.msk [vmem:[%s1886_s13 + $0x54] sm:$0xf] %vm1188_vm1, %v1446_v45  ;;  %v1011_v57 = vmul.f32 %v906_v21, %v625_v47  ;;  %1189 = vst.msk [vmem:[%s1886_s13] sm:$0xf] %vm1188_vm1, %v1425_v50  ;;  %v990_v58 = vmul.f32 %v1831_v63, %v520_v52  ;;  %v1525_v60 = vpop.f32.mrb[4].mxu0 }
  0xf2   : > { %1209 = vst.msk [vmem:[%s1886_s13 + $0x50] sm:$0xf] %vm1188_vm1, %v1445_v51  ;;  %v1010_v59 = vmul.f32 %v901_v22, %v620_v53  ;;  %v1555_v61 = vpop.f32.mrb[4].mxu1  ;;  %v1428_v62 = vpack.c.bf16 %v991_v56, %v991_v56  ;;  %v535_v2 = vadd.f32 %v1525_v60, %v1872_v27  ;;  %v529_v19 = vpop.f32.mrb[5].mxu0 }
  0xf3   : > { %v1448_v0 = vpack.c.bf16 %v1011_v57, %v1011_v57  ;;  %v635_v1 = vadd.f32 %v1555_v61, %v1872_v27  ;;  %v629_v20 = vpop.f32.mrb[5].mxu1  ;;  %v1427_v21 = vpack.c.bf16 %v990_v58, %v990_v58  ;;  %v530_v31 = vadd.f32 %v1872_v27, %v529_v19 }
  0xf4   : > { %v1447_v30 = vpack.c.bf16 %v1010_v59, %v1010_v59  ;;  %v630_v32 = vadd.f32 %v1872_v27, %v629_v20  ;;  %1192 = vst.msk [vmem:[%s1886_s13 + $0xc] sm:$0xf] %vm1188_vm1, %v1428_v62  ;;  %v993_v63 = vmul.f32 %v1833_v3, %v535_v2 }
  0xf5   : > { %1212 = vst.msk [vmem:[%s1886_s13 + $0x5c] sm:$0xf] %vm1188_vm1, %v1448_v0  ;;  %v1013_v22 = vmul.f32 %v916_v23, %v635_v1  ;;  %1191 = vst.msk [vmem:[%s1886_s13 + $0x8] sm:$0xf] %vm1188_vm1, %v1427_v21  ;;  %v992_v33 = vmul.f32 %v1835_v4, %v530_v31  ;;  %v1528_v35 = vpop.f32.mrb[6].mxu0 }
  0xf6   : > { %1211 = vst.msk [vmem:[%s1886_s13 + $0x58] sm:$0xf] %vm1188_vm1, %v1447_v30  ;;  %v1012_v34 = vmul.f32 %v911_v24, %v630_v32  ;;  %v1558_v36 = vpop.f32.mrb[6].mxu1  ;;  %v1430_v37 = vpack.c.bf16 %v993_v63, %v993_v63  ;;  %v545_v39 = vadd.f32 %v1528_v35, %v1872_v27  ;;  %v539_v23 = vpop.f32.mrb[7].mxu0 }
  0xf7   : > { %v1450_v38 = vpack.c.bf16 %v1013_v22, %v1013_v22  ;;  %v645_v3 = vadd.f32 %v1558_v36, %v1872_v27  ;;  %v639_v40 = vpop.f32.mrb[7].mxu1  ;;  %v1429_v41 = vpack.c.bf16 %v992_v33, %v992_v33  ;;  %v540_v43 = vadd.f32 %v1872_v27, %v539_v23  ;;  %v1923_v24 = vpop.permute.xlu1 %955 }
  0xf8   : > { %v1449_v42 = vpack.c.bf16 %v1012_v34, %v1012_v34  ;;  %v640_v4 = vadd.f32 %v1872_v27, %v639_v40  ;;  %1194 = vst.msk [vmem:[%s1886_s13 + $0x14] sm:$0xf] %vm1188_vm1, %v1430_v37  ;;  %v995_v45 = vmul.f32 %v1837_v5, %v545_v39  ;;  %v961_v63 = vpop.permute.xlu0 %960 }
  0xf9   : > { %1214 = vst.msk [vmem:[%s1886_s13 + $0x64] sm:$0xf] %vm1188_vm1, %v1450_v38  ;;  %v1015_v46 = vmul.f32 %v1865_v25, %v645_v3  ;;  %1193 = vst.msk [vmem:[%s1886_s13 + $0x10] sm:$0xf] %vm1188_vm1, %v1429_v41  ;;  %v994_v47 = vmul.f32 %v1839_v6, %v540_v43  ;;  %v1531_v49 = vpop.f32.mrb[8].mxu0 }
  0xfa   : > { %1213 = vst.msk [vmem:[%s1886_s13 + $0x60] sm:$0xf] %vm1188_vm1, %v1449_v42  ;;  %v1014_v48 = vmul.f32 %v1867_v26, %v640_v4  ;;  %v1561_v50 = vpop.f32.mrb[8].mxu1  ;;  %v1432_v51 = vpack.c.bf16 %v995_v45, %v995_v45  ;;  %v555_v5 = vadd.f32 %v1531_v49, %v1872_v27  ;;  %v549_v53 = vpop.f32.mrb[9].mxu0 }
  0xfb   : > { %v1452_v52 = vpack.c.bf16 %v1015_v46, %v1015_v46  ;;  %v655_v25 = vadd.f32 %v1561_v50, %v1872_v27  ;;  %v649_v56 = vpop.f32.mrb[9].mxu1  ;;  %v1431_v57 = vpack.c.bf16 %v994_v47, %v994_v47  ;;  %v550_v59 = vadd.f32 %v1872_v27, %v549_v53 }
  0xfc   : > { %v1451_v58 = vpack.c.bf16 %v1014_v48, %v1014_v48  ;;  %v650_v6 = vadd.f32 %v1872_v27, %v649_v56  ;;  %1196 = vst.msk [vmem:[%s1886_s13 + $0x1c] sm:$0xf] %vm1188_vm1, %v1432_v51  ;;  %v997_v26 = vmul.f32 %v1841_v7, %v555_v5  ;;  %v971_v53 = vpop.permute.xlu0 %970 }
  0xfd   : > { %1216 = vst.msk [vmem:[%s1886_s13 + $0x6c] sm:$0xf] %vm1188_vm1, %v1452_v52  ;;  %v1017_v60 = vmul.f32 %v1874_v28, %v655_v25  ;;  %1195 = vst.msk [vmem:[%s1886_s13 + $0x18] sm:$0xf] %vm1188_vm1, %v1431_v57  ;;  %v996_v61 = vmul.f32 %v1843_v8, %v550_v59  ;;  %v1534_v0 = vpop.f32.mrb[10].mxu0 }
  0xfe   : > { %1215 = vst.msk [vmem:[%s1886_s13 + $0x68] sm:$0xf] %vm1188_vm1, %v1451_v58  ;;  %v1016_v62 = vmul.f32 %v1876_v29, %v650_v6  ;;  %v1564_v2 = vpop.f32.mrb[10].mxu1  ;;  %v1434_v1 = vpack.c.bf16 %v997_v26, %v997_v26  ;;  %v565_v7 = vadd.f32 %v1534_v0, %v1872_v27  ;;  %v559_v20 = vpop.f32.mrb[11].mxu0 }
  0xff   : > { %v1454_v19 = vpack.c.bf16 %v1017_v60, %v1017_v60  ;;  %v665_v28 = vadd.f32 %v1564_v2, %v1872_v27  ;;  %v659_v21 = vpop.f32.mrb[11].mxu1  ;;  %v1433_v30 = vpack.c.bf16 %v996_v61, %v996_v61  ;;  %v560_v8 = vadd.f32 %v1872_v27, %v559_v20  ;;  %v966_v29 = vpop.permute.xlu1 %965 }
 0x100   : > { %v1453_v31 = vpack.c.bf16 %v1016_v62, %v1016_v62  ;;  %v660_v32 = vadd.f32 %v1872_v27, %v659_v21  ;;  %1198 = vst.msk [vmem:[%s1886_s13 + $0x24] sm:$0xf] %vm1188_vm1, %v1434_v1  ;;  %v999_v22 = vmul.f32 %v1845_v9, %v565_v7 }
 0x101   : > { %1218 = vst.msk [vmem:[%s1886_s13 + $0x74] sm:$0xf] %vm1188_vm1, %v1454_v19  ;;  %v1019_v33 = vmul.f32 %v1892_v54, %v665_v28  ;;  %1197 = vst.msk [vmem:[%s1886_s13 + $0x20] sm:$0xf] %vm1188_vm1, %v1433_v30  ;;  %v998_v34 = vmul.f32 %v1847_v10, %v560_v8  ;;  %v1537_v36 = vpop.f32.mrb[12].mxu0 }
 0x102   : > { %1217 = vst.msk [vmem:[%s1886_s13 + $0x70] sm:$0xf] %vm1188_vm1, %v1453_v31  ;;  %v1018_v35 = vmul.f32 %v1894_v55, %v660_v32  ;;  %v1567_v37 = vpop.f32.mrb[12].mxu1  ;;  %v1436_v38 = vpack.c.bf16 %v999_v22, %v999_v22  ;;  %v575_v9 = vadd.f32 %v1537_v36, %v1872_v27  ;;  %v569_v3 = vpop.f32.mrb[13].mxu0 }
 0x103   : > { %v1456_v39 = vpack.c.bf16 %v1019_v33, %v1019_v33  ;;  %v675_v54 = vadd.f32 %v1567_v37, %v1872_v27  ;;  %v669_v23 = vpop.f32.mrb[13].mxu1  ;;  %v1435_v40 = vpack.c.bf16 %v998_v34, %v998_v34  ;;  %v570_v42 = vadd.f32 %v1872_v27, %v569_v3 }
 0x104   : > { %v1455_v41 = vpack.c.bf16 %v1018_v35, %v1018_v35  ;;  %v670_v10 = vadd.f32 %v1872_v27, %v669_v23  ;;  %1200 = vst.msk [vmem:[%s1886_s13 + $0x2c] sm:$0xf] %vm1188_vm1, %v1436_v38  ;;  %v1001_v55 = vmul.f32 %v1849_v11, %v575_v9  ;;  %v981_v38 = vpop.permute.xlu0 %980 }
 0x105   : > { %1220 = vst.msk [vmem:[%s1886_s13 + $0x7c] sm:$0xf] %vm1188_vm1, %v1456_v39  ;;  %v1021_v43 = vmul.f32 %v1923_v24, %v675_v54  ;;  %1199 = vst.msk [vmem:[%s1886_s13 + $0x28] sm:$0xf] %vm1188_vm1, %v1435_v40  ;;  %v1000_v4 = vmul.f32 %v1851_v12, %v570_v42  ;;  %v1540_v46 = vpop.f32.mrb[14].mxu0 }
 0x106   : > { %1219 = vst.msk [vmem:[%s1886_s13 + $0x78] sm:$0xf] %vm1188_vm1, %v1455_v41  ;;  %v1020_v45 = vmul.f32 %v1925_v44, %v670_v10  ;;  %v1570_v47 = vpop.f32.mrb[14].mxu1  ;;  %v1438_v48 = vpack.c.bf16 %v1001_v55, %v1001_v55  ;;  %v585_v11 = vadd.f32 %v1540_v46, %v1872_v27  ;;  %v579_v50 = vpop.f32.mrb[15].mxu0 }
 0x107   : > { %v1458_v49 = vpack.c.bf16 %v1021_v43, %v1021_v43  ;;  %v685_v24 = vadd.f32 %v1570_v47, %v1872_v27  ;;  %v679_v51 = vpop.f32.mrb[15].mxu1  ;;  %v1437_v52 = vpack.c.bf16 %v1000_v4, %v1000_v4  ;;  %v580_v12 = vadd.f32 %v1872_v27, %v579_v50  ;;  %v976_v44 = vpop.permute.xlu1 %975 }
 0x108   : > { %v1457_v5 = vpack.c.bf16 %v1020_v45, %v1020_v45  ;;  %v680_v25 = vadd.f32 %v1872_v27, %v679_v51  ;;  %1202 = vst.msk [vmem:[%s1886_s13 + $0x34] sm:$0xf] %vm1188_vm1, %v1438_v48  ;;  %v1003_v56 = vmul.f32 %v1853_v13, %v585_v11 }
 0x109   : > { %1222 = vst.msk [vmem:[%s1886_s13 + $0x84] sm:$0xf] %vm1188_vm1, %v1458_v49  ;;  %v1023_v57 = vmul.f32 %v966_v29, %v685_v24  ;;  %1201 = vst.msk [vmem:[%s1886_s13 + $0x30] sm:$0xf] %vm1188_vm1, %v1437_v52  ;;  %v1002_v58 = vmul.f32 %v1855_v14, %v580_v12  ;;  %v1543_v6 = vpop.f32.mrb[16].mxu0 }
 0x10a   : > { %1221 = vst.msk [vmem:[%s1886_s13 + $0x80] sm:$0xf] %vm1188_vm1, %v1457_v5  ;;  %v1022_v59 = vmul.f32 %v961_v63, %v680_v25  ;;  %v1573_v26 = vpop.f32.mrb[16].mxu1  ;;  %v1440_v60 = vpack.c.bf16 %v1003_v56, %v1003_v56  ;;  %v595_v62 = vadd.f32 %v1543_v6, %v1872_v27  ;;  %v589_v0 = vpop.f32.mrb[17].mxu0 }
 0x10b   : > { %v1460_v61 = vpack.c.bf16 %v1023_v57, %v1023_v57  ;;  %v695_v13 = vadd.f32 %v1573_v26, %v1872_v27  ;;  %v689_v2 = vpop.f32.mrb[17].mxu1  ;;  %v1439_v1 = vpack.c.bf16 %v1002_v58, %v1002_v58  ;;  %v590_v7 = vadd.f32 %v1872_v27, %v589_v0  ;;  %v986_v34 = vpop.permute.xlu1 %985 }
 0x10c   : > { %v1459_v19 = vpack.c.bf16 %v1022_v59, %v1022_v59  ;;  %v690_v28 = vadd.f32 %v1872_v27, %v689_v2  ;;  %1204 = vst.msk [vmem:[%s1886_s13 + $0x3c] sm:$0xf] %vm1188_vm1, %v1440_v60  ;;  %v1005_v14 = vmul.f32 %v1857_v15, %v595_v62 }
 0x10d   : > { %1224 = vst.msk [vmem:[%s1886_s13 + $0x8c] sm:$0xf] %vm1188_vm1, %v1460_v61  ;;  %v1025_v20 = vmul.f32 %v976_v44, %v695_v13  ;;  %1203 = vst.msk [vmem:[%s1886_s13 + $0x38] sm:$0xf] %vm1188_vm1, %v1439_v1  ;;  %v1004_v21 = vmul.f32 %v1859_v16, %v590_v7  ;;  %v1546_v31 = vpop.f32.mrb[18].mxu0 }
 0x10e   : > { %1223 = vst.msk [vmem:[%s1886_s13 + $0x88] sm:$0xf] %vm1188_vm1, %v1459_v19  ;;  %v1024_v30 = vmul.f32 %v971_v53, %v690_v28  ;;  %v1576_v8 = vpop.f32.mrb[18].mxu1  ;;  %v1442_v32 = vpack.c.bf16 %v1005_v14, %v1005_v14  ;;  %v605_v63 = vadd.f32 %v1546_v31, %v1872_v27  ;;  %v599_v22 = vpop.f32.mrb[19].mxu0 }
 0x10f   : > { %v1462_v29 = vpack.c.bf16 %v1025_v20, %v1025_v20  ;;  %v705_v15 = vadd.f32 %v1576_v8, %v1872_v27  ;;  %v699_v33 = vpop.f32.mrb[19].mxu1  ;;  %v1441_v35 = vpack.c.bf16 %v1004_v21, %v1004_v21  ;;  %v600_v16 = vadd.f32 %v1872_v27, %v599_v22 }
 0x110   : > { %v1461_v36 = vpack.c.bf16 %v1024_v30, %v1024_v30  ;;  %v700_v37 = vadd.f32 %v1872_v27, %v699_v33  ;;  %1206 = vst.msk [vmem:[%s1886_s13 + $0x44] sm:$0xf] %vm1188_vm1, %v1442_v32  ;;  %v1007_v39 = vmul.f32 %v1861_v17, %v605_v63 }
 0x111   : > { %1226 = vst.msk [vmem:[%s1886_s13 + $0x94] sm:$0xf] %vm1188_vm1, %v1462_v29  ;;  %v1027_v9 = vmul.f32 %v986_v34, %v705_v15  ;;  %1205 = vst.msk [vmem:[%s1886_s13 + $0x40] sm:$0xf] %vm1188_vm1, %v1441_v35  ;;  %v1006_v54 = vmul.f32 %v1863_v18, %v600_v16 }
 0x112   : > { %1225 = vst.msk [vmem:[%s1886_s13 + $0x90] sm:$0xf] %vm1188_vm1, %v1461_v36  ;;  %v1026_v3 = vmul.f32 %v981_v38, %v700_v37  ;;  %v1444_v23 = vpack.c.bf16 %v1007_v39, %v1007_v39 }
 0x113   : > { %v1464_v40 = vpack.c.bf16 %v1027_v9, %v1027_v9  ;;  %v1443_v27 = vpack.c.bf16 %v1006_v54, %v1006_v54 }
 0x114   : > { %v1463_v41 = vpack.c.bf16 %v1026_v3, %v1026_v3  ;;  %1208 = vst.msk [vmem:[%s1886_s13 + $0x4c] sm:$0xf] %vm1188_vm1, %v1444_v23 }
 0x115   : > { %1228 = vst.msk [vmem:[%s1886_s13 + $0x9c] sm:$0xf] %vm1188_vm1, %v1464_v40  ;;  %1207 = vst.msk [vmem:[%s1886_s13 + $0x48] sm:$0xf] %vm1188_vm1, %v1443_v27 }
 0x116   : > { %1227 = vst.msk [vmem:[%s1886_s13 + $0x98] sm:$0xf] %vm1188_vm1, %v1463_v41 }
 0x117 PF: > { %s14_s17 = sadd.s32 1, %s1640_s17   ;;  %s2051_s15 = smov %s1636_s16 }
 0x118   : > { %p11_p5 = scmp.ge.s32.totalorder %s14_s17, 4   ;;  %s2052_s16 = smov %s2054_s18 }
 0x11a   :  { %13 = sbr.rel (!%p11_p5) target bundleno = 2 (0x2), region = 69 }

</bundles_post_ra>
